<compile_context>
chip_gen: v5e
topology: v5e:2x2
jax: 0.10.0
libtpu: 0.0.40
codegen_flags: <defaults>
</compile_context>

<pallas_src>
import jax
import jax.numpy as jnp
from jax.experimental import pallas as pl
from jax.experimental.pallas import tpu as pltpu

_IMG_FILL = 255            # numpy pad constant for the image
_LANE = 128
_SUBLANE = 8


def _round_up(x, m):
    return -(-x // m) * m


def _vmem_capacity_bytes():
    """Physical VMEM per TensorCore (128 MiB on v5e/v6e, 64 MiB on v7x)."""
    try:
        return int(pltpu.get_tpu_info().vmem_capacity_bytes)
    except Exception:  # non-TPU tracing environments
        return 64 * 1024 * 1024


def _pick_tile(total, align, bytes_per_unit, budget):
    """Tile (multiple of `align`, used with a cdiv grid) along an axis of
    extent `total`.

    - honours the per-step byte budget (never below one alignment unit),
    - caps at ~half the extent so the grid has >= 2 steps whenever the axis is
      larger than one alignment unit (DMA pipelining; v7x dual-TC sharding)."""
    if total <= align:
        return total
    by_budget = max(1, budget // max(1, bytes_per_unit * align)) * align
    by_balance = _round_up((total + 1) // 2, align)
    return max(align, min(by_budget, by_balance))


def _compiler_params(step_bytes, extra_bytes=0):
    cap = _vmem_capacity_bytes()
    # Double-buffered pipeline blocks + persistent scratch + margin, clamped
    # well under the physical per-core VMEM (matters on v7x: 64 MiB).
    need = 2 * step_bytes + extra_bytes + (4 << 20)
    ceiling = max(16 << 20, int(cap * 0.85))
    limit = int(min(max(need, min(32 << 20, ceiling)), ceiling))
    return pltpu.CompilerParams(
        dimension_semantics=("parallel",),
        vmem_limit_bytes=limit,
    )


# --------------------------------------------------------------------------
# H < W: pad along H (sublane axis).  Grid over lane tiles; dynamic row
# offset from SMEM scalar prefetch, pasted with a dynamic pl.ds slice.
# --------------------------------------------------------------------------
def _make_pad_rows_kernel(h, s, tn_img, tn_br):
    diff = s - h

    def kernel(pad_ref, img_ref, bnd_ref, room_ref, img_out, bnd_out, room_out):
        pad_h = pad_ref[0]
        if diff <= h:
            # Fill only the pad strips: rows [0, diff) u [h, s) together with
            # the paste [pad_h, pad_h + h) cover [0, s) for every pad_h in
            # [0, diff]; the small overlap rewrite is free under the DMA
            # bottleneck.
            img_out[0:diff, :] = jnp.full((diff, tn_img), _IMG_FILL, img_out.dtype)
            img_out[h:s, :] = jnp.full((diff, tn_img), _IMG_FILL, img_out.dtype)
            bnd_out[0:diff, :] = jnp.zeros((diff, tn_br), bnd_out.dtype)
            bnd_out[h:s, :] = jnp.zeros((diff, tn_br), bnd_out.dtype)
            room_out[0:diff, :] = jnp.zeros((diff, tn_br), room_out.dtype)
            room_out[h:s, :] = jnp.zeros((diff, tn_br), room_out.dtype)
        else:
            # Very elongated input: one full fill writes fewer rows than two
            # diff-row strips.
            img_out[...] = jnp.full((s, tn_img), _IMG_FILL, img_out.dtype)
            bnd_out[...] = jnp.zeros((s, tn_br), bnd_out.dtype)
            room_out[...] = jnp.zeros((s, tn_br), room_out.dtype)
        # Paste the source block at the dynamic row (sublane) offset.
        img_out[pl.ds(pad_h, h), :] = img_ref[...]
        bnd_out[pl.ds(pad_h, h), :] = bnd_ref[...]
        room_out[pl.ds(pad_h, h), :] = room_ref[...]

    return kernel


def _fill_pad_rows(image, boundary, room, pad_h):
    h, w, c = image.shape
    s = w
    img2d = image.reshape(h, w * c)                    # lane-dense image view
    img_it = image.dtype.itemsize
    bnd_it = boundary.dtype.itemsize
    room_it = room.dtype.itemsize

    cap = _vmem_capacity_bytes()
    budget = min(8 << 20, cap // 8)                    # per-step working set
    bytes_per_col = (h + s) * (c * img_it + bnd_it + room_it)
    tn_br = _pick_tile(w, _LANE, bytes_per_col, budget)   # boundary/room lane tile
    tn_img = tn_br * c                                 # image lane tile
    n = pl.cdiv(w, tn_br)                              # cdiv grid, ragged tail OK
    step_bytes = tn_br * bytes_per_col

    kernel = _make_pad_rows_kernel(h, s, tn_img, tn_br)
    grid_spec = pltpu.PrefetchScalarGridSpec(
        num_scalar_prefetch=1,
        grid=(n,),
        in_specs=[
            pl.BlockSpec((h, tn_img), lambda j, pad: (0, j)),
            pl.BlockSpec((h, tn_br), lambda j, pad: (0, j)),
            pl.BlockSpec((h, tn_br), lambda j, pad: (0, j)),
        ],
        out_specs=[
            pl.BlockSpec((s, tn_img), lambda j, pad: (0, j)),
            pl.BlockSpec((s, tn_br), lambda j, pad: (0, j)),
            pl.BlockSpec((s, tn_br), lambda j, pad: (0, j)),
        ],
    )
    out_shape = (
        jax.ShapeDtypeStruct((s, s * c), image.dtype),
        jax.ShapeDtypeStruct((s, s), boundary.dtype),
        jax.ShapeDtypeStruct((s, s), room.dtype),
    )
    in_bytes = h * w * (c * img_it + bnd_it + room_it)
    out_bytes = s * s * (c * img_it + bnd_it + room_it)

    pads = jnp.reshape(jnp.asarray(pad_h, dtype=jnp.int32), (1,))
    img_out, bnd_out, room_out = pl.pallas_call(
        kernel,
        grid_spec=grid_spec,
        out_shape=out_shape,
        compiler_params=_compiler_params(step_bytes),
        cost_estimate=pl.CostEstimate(
            flops=0, transcendentals=0, bytes_accessed=in_bytes + out_bytes),
    )(pads, img2d, boundary, room)
    return img_out.reshape(s, s, c), bnd_out, room_out


# --------------------------------------------------------------------------
# H > W: pad along W (lane axis).  Grid over row tiles; the content is
# composed into a 128-aligned canvas (source at lane 0, fill elsewhere),
# rotated by the dynamic pad offset with pltpu.roll (XLU — free under the
# DMA bottleneck), then written with one lane-dense unmasked store.
# --------------------------------------------------------------------------
def _make_pad_cols_kernel(w, c, s):
    wc = w * c

    def kernel(pad_ref, img_ref, bnd_ref, room_ref, img_out, bnd_out, room_out,
               img_scr, bnd_scr, room_scr):
        pad_w = pad_ref[0]

        def place(src_ref, scr_ref, out_ref, width, fill, shift):
            rows, canvas = scr_ref.shape
            scr_ref[:, 0:width] = src_ref[...]
            scr_ref[:, width:canvas] = jnp.full(
                (rows, canvas - width), fill, scr_ref.dtype)
            # Wrapped lanes are all `fill`, so no wrap-around fix-up is needed.
            rolled = pltpu.roll(scr_ref[...], shift, axis=1)
            out_ref[...] = rolled[:, 0:out_ref.shape[1]]

        place(img_ref, img_scr, img_out, wc, _IMG_FILL, pad_w * c)
        place(bnd_ref, bnd_scr, bnd_out, w, 0, pad_w)
        place(room_ref, room_scr, room_out, w, 0, pad_w)

    return kernel


def _fill_pad_cols(image, boundary, room, pad_w):
    h, w, c = image.shape
    s = h
    img2d = image.reshape(h, w * c)
    img_it = image.dtype.itemsize
    bnd_it = boundary.dtype.itemsize
    room_it = room.dtype.itemsize

    cap = _vmem_capacity_bytes()
    budget = min(8 << 20, cap // 8)
    bytes_per_row = (w + s) * (c * img_it + bnd_it + room_it)
    tm = _pick_tile(h, _SUBLANE, bytes_per_row, budget)   # row (sublane) tile
    n = pl.cdiv(h, tm)                                    # cdiv grid, ragged tail OK
    step_bytes = tm * bytes_per_row

    # 128-lane-aligned canvases for the dynamic rotate.
    canvas_img = max(_LANE, _round_up(s * c, _LANE))
    canvas_br = max(_LANE, _round_up(s, _LANE))
    scratch = [
        pltpu.VMEM((tm, canvas_img), image.dtype),
        pltpu.VMEM((tm, canvas_br), boundary.dtype),
        pltpu.VMEM((tm, canvas_br), room.dtype),
    ]
    scratch_bytes = tm * (canvas_img * img_it + canvas_br * (bnd_it + room_it))

    kernel = _make_pad_cols_kernel(w, c, s)
    grid_spec = pltpu.PrefetchScalarGridSpec(
        num_scalar_prefetch=1,
        grid=(n,),
        in_specs=[
            pl.BlockSpec((tm, w * c), lambda i, pad: (i, 0)),
            pl.BlockSpec((tm, w), lambda i, pad: (i, 0)),
            pl.BlockSpec((tm, w), lambda i, pad: (i, 0)),
        ],
        out_specs=[
            pl.BlockSpec((tm, s * c), lambda i, pad: (i, 0)),
            pl.BlockSpec((tm, s), lambda i, pad: (i, 0)),
            pl.BlockSpec((tm, s), lambda i, pad: (i, 0)),
        ],
        scratch_shapes=scratch,
    )
    out_shape = (
        jax.ShapeDtypeStruct((s, s * c), image.dtype),
        jax.ShapeDtypeStruct((s, s), boundary.dtype),
        jax.ShapeDtypeStruct((s, s), room.dtype),
    )
    in_bytes = h * w * (c * img_it + bnd_it + room_it)
    out_bytes = s * s * (c * img_it + bnd_it + room_it)

    pads = jnp.reshape(jnp.asarray(pad_w, dtype=jnp.int32), (1,))
    img_out, bnd_out, room_out = pl.pallas_call(
        kernel,
        grid_spec=grid_spec,
        out_shape=out_shape,
        compiler_params=_compiler_params(step_bytes, extra_bytes=scratch_bytes),
        cost_estimate=pl.CostEstimate(
            flops=0, transcendentals=0, bytes_accessed=in_bytes + out_bytes),
    )(pads, img2d, boundary, room)
    return img_out.reshape(s, s, c), bnd_out, room_out


def fill_shape(image, boundary, room, fill_type="center", rng_key=None):
    """JAX/Pallas equivalent of FillShape.forward(image, boundary, room)."""
    t = fill_type.strip().lower()
    assert t in ("none", "random", "center")
    if t == "none":
        return image, boundary, room

    h, w, c = image.shape
    if h == w:
        return image, boundary, room
    assert boundary.shape == (h, w) and room.shape == (h, w)

    diff = abs(w - h)
    if t == "center":
        pad = diff // 2
    else:
        key = rng_key if rng_key is not None else jax.random.PRNGKey(0)
        # Traced offset for BOTH orientations: no host sync, no per-draw
        # recompile; consumed in-kernel via SMEM scalar prefetch.
        pad = jax.random.randint(key, (), 0, diff + 1, dtype=jnp.int32)

    if h < w:
        return _fill_pad_rows(image, boundary, room, pad)
    return _fill_pad_cols(image, boundary, room, pad)


if __name__ == "__main__":
    key = jax.random.PRNGKey(0)
    k_img, k_bnd, k_room, k_r1, k_r2, k_big = jax.random.split(key, 6)

    def ref_pad(image, boundary, room, pad_h, pad_w):
        h, w, _ = image.shape
        s = max(h, w)
        hp = (pad_h, s - h - pad_h)
        wp = (pad_w, s - w - pad_w)
        return (
            jnp.pad(image, (hp, wp, (0, 0)), constant_values=255),
            jnp.pad(boundary, (hp, wp)),
            jnp.pad(room, (hp, wp)),
        )

    def check(got, exp):
        for g, e in zip(got, exp):
            assert g.shape == e.shape and g.dtype == e.dtype
            assert bool(jnp.array_equal(g, e))

    # --- case 1: H < W, 'center' (rows path) --------------------------------
    h, w, c = 8, 16, 3
    image = jnp.round(jax.random.uniform(k_img, (h, w, c), dtype=jnp.float32) * 255.0)
    boundary = jax.random.randint(k_bnd, (h, w), 0, 4, dtype=jnp.int32)
    room = jax.random.randint(k_room, (h, w), 0, 10, dtype=jnp.int32)
    out = fill_shape(image, boundary, room, "center")
    jax.block_until_ready(out)
    check(out, ref_pad(image, boundary, room, (w - h) // 2, 0))

    # --- case 2: H > W, 'center' (cols path: dynamic lane roll, grid >= 2) --
    image2 = image.reshape(w, h, c)
    boundary2 = boundary.reshape(w, h)
    room2 = room.reshape(w, h)
    out = fill_shape(image2, boundary2, room2, "center")
    jax.block_until_ready(out)
    check(out, ref_pad(image2, boundary2, room2, 0, (w - h) // 2))

    # --- case 3: H < W, 'random' under jit (dynamic SMEM row offset) --------
    rand_fn = jax.jit(lambda im, b, r, k: fill_shape(im, b, r, "random", k))
    out = rand_fn(image, boundary, room, k_r1)
    jax.block_until_ready(out)
    exp_pad = int(jax.random.randint(k_r1, (), 0, (w - h) + 1, dtype=jnp.int32))
    check(out, ref_pad(image, boundary, room, exp_pad, 0))

    # --- case 4: H > W, 'random' under jit (previously host-synced) ---------
    out = rand_fn(image2, boundary2, room2, k_r2)
    jax.block_until_ready(out)
    exp_pad = int(jax.random.randint(k_r2, (), 0, (w - h) + 1, dtype=jnp.int32))
    check(out, ref_pad(image2, boundary2, room2, 0, exp_pad))

    # --- case 5: 128-unaligned W (cdiv grid, ragged last lane block) --------
    h5, w5 = 40, 200
    k5a, k5b, k5c = jax.random.split(k_big, 3)
    image5 = jnp.round(jax.random.uniform(k5a, (h5, w5, c), dtype=jnp.float32) * 255.0)
    boundary5 = jax.random.randint(k5b, (h5, w5), 0, 4, dtype=jnp.int32)
    room5 = jax.random.randint(k5c, (h5, w5), 0, 10, dtype=jnp.int32)
    out = fill_shape(image5, boundary5, room5, "center")
    jax.block_until_ready(out)
    check(out, ref_pad(image5, boundary5, room5, (w5 - h5) // 2, 0))

    # --- case 6: tall input (cdiv grid, ragged last row block) --------------
    image6 = image5.reshape(w5, h5, c)
    boundary6 = boundary5.reshape(w5, h5)
    room6 = room5.reshape(w5, h5)
    out = fill_shape(image6, boundary6, room6, "center")
    jax.block_until_ready(out)
    check(out, ref_pad(image6, boundary6, room6, 0, (w5 - h5) // 2))

    print("KERNEL_OK")
</pallas_src>

<mosaic_0001>
module attributes {stable_mosaic.version = 11 : i64} {
  func.func @kernel(%arg0: i32, %arg1: memref<1xi32, #tpu.memory_space<smem>>, %arg2: memref<8x48xf32, #tpu.memory_space<vmem>>, %arg3: memref<8x16xi32, #tpu.memory_space<vmem>>, %arg4: memref<8x16xi32, #tpu.memory_space<vmem>>, %arg5: memref<16x48xf32, #tpu.memory_space<vmem>>, %arg6: memref<16x16xi32, #tpu.memory_space<vmem>>, %arg7: memref<16x16xi32, #tpu.memory_space<vmem>>) attributes {dimension_semantics = [#tpu.dimension_semantics<parallel>], iteration_bounds = array<i64: 1>, scalar_prefetch = 1 : i64, scratch_operands = 0 : i64, tpu.core_type = #tpu.core_type<tc>, window_params = [{transform_indices = @transform_0, window_bounds = array<i64: 8, 48>}, {transform_indices = @transform_1, window_bounds = array<i64: 8, 16>}, {transform_indices = @transform_2, window_bounds = array<i64: 8, 16>}, {transform_indices = @transform_3, window_bounds = array<i64: 16, 48>}, {transform_indices = @transform_4, window_bounds = array<i64: 16, 16>}, {transform_indices = @transform_5, window_bounds = array<i64: 16, 16>}]} {
    %c0 = arith.constant 0 : index
    %0 = memref.load %arg1[%c0] : memref<1xi32, #tpu.memory_space<smem>>
    %cst = arith.constant 2.550000e+02 : f32
    %1 = vector.broadcast %cst : f32 to vector<8x48xf32>
    %c0_0 = arith.constant 0 : index
    %c0_1 = arith.constant 0 : index
    %2 = vector.load %arg5[%c0_0, %c0_1] : memref<16x48xf32, #tpu.memory_space<vmem>>, vector<8x48xf32>
    tpu.vector_store %arg5[%c0_0, %c0_1], %1 {strides = array<i32>} : memref<16x48xf32, #tpu.memory_space<vmem>>, vector<8x48xf32>,
    %cst_2 = arith.constant 2.550000e+02 : f32
    %3 = vector.broadcast %cst_2 : f32 to vector<8x48xf32>
    %c8 = arith.constant 8 : index
    %c0_3 = arith.constant 0 : index
    %4 = vector.load %arg5[%c8, %c0_3] : memref<16x48xf32, #tpu.memory_space<vmem>>, vector<8x48xf32>
    tpu.vector_store %arg5[%c8, %c0_3], %3 {strides = array<i32>} : memref<16x48xf32, #tpu.memory_space<vmem>>, vector<8x48xf32>,
    %c0_i32 = arith.constant 0 : i32
    %5 = vector.broadcast %c0_i32 : i32 to vector<8x16xi32>
    %c0_4 = arith.constant 0 : index
    %c0_5 = arith.constant 0 : index
    %6 = vector.load %arg6[%c0_4, %c0_5] : memref<16x16xi32, #tpu.memory_space<vmem>>, vector<8x16xi32>
    tpu.vector_store %arg6[%c0_4, %c0_5], %5 {strides = array<i32>} : memref<16x16xi32, #tpu.memory_space<vmem>>, vector<8x16xi32>,
    %c0_i32_6 = arith.constant 0 : i32
    %7 = vector.broadcast %c0_i32_6 : i32 to vector<8x16xi32>
    %c8_7 = arith.constant 8 : index
    %c0_8 = arith.constant 0 : index
    %8 = vector.load %arg6[%c8_7, %c0_8] : memref<16x16xi32, #tpu.memory_space<vmem>>, vector<8x16xi32>
    tpu.vector_store %arg6[%c8_7, %c0_8], %7 {strides = array<i32>} : memref<16x16xi32, #tpu.memory_space<vmem>>, vector<8x16xi32>,
    %c0_i32_9 = arith.constant 0 : i32
    %9 = vector.broadcast %c0_i32_9 : i32 to vector<8x16xi32>
    %c0_10 = arith.constant 0 : index
    %c0_11 = arith.constant 0 : index
    %10 = vector.load %arg7[%c0_10, %c0_11] : memref<16x16xi32, #tpu.memory_space<vmem>>, vector<8x16xi32>
    tpu.vector_store %arg7[%c0_10, %c0_11], %9 {strides = array<i32>} : memref<16x16xi32, #tpu.memory_space<vmem>>, vector<8x16xi32>,
    %c0_i32_12 = arith.constant 0 : i32
    %11 = vector.broadcast %c0_i32_12 : i32 to vector<8x16xi32>
    %c8_13 = arith.constant 8 : index
    %c0_14 = arith.constant 0 : index
    %12 = vector.load %arg7[%c8_13, %c0_14] : memref<16x16xi32, #tpu.memory_space<vmem>>, vector<8x16xi32>
    tpu.vector_store %arg7[%c8_13, %c0_14], %11 {strides = array<i32>} : memref<16x16xi32, #tpu.memory_space<vmem>>, vector<8x16xi32>,
    %c0_15 = arith.constant 0 : index
    %c0_16 = arith.constant 0 : index
    %13 = vector.load %arg2[%c0_15, %c0_16] : memref<8x48xf32, #tpu.memory_space<vmem>>, vector<8x48xf32>
    %14 = arith.index_cast %0 : i32 to index
    %c0_17 = arith.constant 0 : index
    %15 = vector.load %arg5[%14, %c0_17] : memref<16x48xf32, #tpu.memory_space<vmem>>, vector<8x48xf32>
    tpu.vector_store %arg5[%14, %c0_17], %13 {strides = array<i32>} : memref<16x48xf32, #tpu.memory_space<vmem>>, vector<8x48xf32>,
    %c0_18 = arith.constant 0 : index
    %c0_19 = arith.constant 0 : index
    %16 = vector.load %arg3[%c0_18, %c0_19] : memref<8x16xi32, #tpu.memory_space<vmem>>, vector<8x16xi32>
    %17 = arith.index_cast %0 : i32 to index
    %c0_20 = arith.constant 0 : index
    %18 = vector.load %arg6[%17, %c0_20] : memref<16x16xi32, #tpu.memory_space<vmem>>, vector<8x16xi32>
    tpu.vector_store %arg6[%17, %c0_20], %16 {strides = array<i32>} : memref<16x16xi32, #tpu.memory_space<vmem>>, vector<8x16xi32>,
    %c0_21 = arith.constant 0 : index
    %c0_22 = arith.constant 0 : index
    %19 = vector.load %arg4[%c0_21, %c0_22] : memref<8x16xi32, #tpu.memory_space<vmem>>, vector<8x16xi32>
    %20 = arith.index_cast %0 : i32 to index
    %c0_23 = arith.constant 0 : index
    %21 = vector.load %arg7[%20, %c0_23] : memref<16x16xi32, #tpu.memory_space<vmem>>, vector<8x16xi32>
    tpu.vector_store %arg7[%20, %c0_23], %19 {strides = array<i32>} : memref<16x16xi32, #tpu.memory_space<vmem>>, vector<8x16xi32>,
    return
  }
  func.func @transform_0(%arg0: i32, %arg1: memref<1xi32, #tpu.memory_space<smem>>) -> (i32, i32) {
    %c0_i32 = arith.constant 0 : i32
    %c0_i32_0 = arith.constant 0 : i32
    return %c0_i32, %arg0 : i32, i32
  }
  func.func @transform_1(%arg0: i32, %arg1: memref<1xi32, #tpu.memory_space<smem>>) -> (i32, i32) {
    %c0_i32 = arith.constant 0 : i32
    %c0_i32_0 = arith.constant 0 : i32
    return %c0_i32, %arg0 : i32, i32
  }
  func.func @transform_2(%arg0: i32, %arg1: memref<1xi32, #tpu.memory_space<smem>>) -> (i32, i32) {
    %c0_i32 = arith.constant 0 : i32
    %c0_i32_0 = arith.constant 0 : i32
    return %c0_i32, %arg0 : i32, i32
  }
  func.func @transform_3(%arg0: i32, %arg1: memref<1xi32, #tpu.memory_space<smem>>) -> (i32, i32) {
    %c0_i32 = arith.constant 0 : i32
    %c0_i32_0 = arith.constant 0 : i32
    return %c0_i32, %arg0 : i32, i32
  }
  func.func @transform_4(%arg0: i32, %arg1: memref<1xi32, #tpu.memory_space<smem>>) -> (i32, i32) {
    %c0_i32 = arith.constant 0 : i32
    %c0_i32_0 = arith.constant 0 : i32
    return %c0_i32, %arg0 : i32, i32
  }
  func.func @transform_5(%arg0: i32, %arg1: memref<1xi32, #tpu.memory_space<smem>>) -> (i32, i32) {
    %c0_i32 = arith.constant 0 : i32
    %c0_i32_0 = arith.constant 0 : i32
    return %c0_i32, %arg0 : i32, i32
  }
}

</mosaic_0001>

<bundles_post_ra>
// kernel: tpu_custom_call.1
= control target key start
LH: loop header
LB: loop body
LE: loop exit
PB: predicated region body
PF: predicated region fallthrough
CT: control target
= control target key end

     0   :  { %13 = vsyncpa [#allocation5], 0  ;;  %s384_s0 = inlined_call_operand.<no memory space> [shape: s32[1], index: 0, kind: input, shape index: {}]   ;;  %s385_s1 = inlined_call_operand.hbm [shape: f32[8,48], index: 1, kind: input, shape index: {}]   ;;  %s386_s2 = inlined_call_operand.hbm [shape: s32[8,16], index: 2, kind: input, shape index: {}]   ;;  %s387_s3 = inlined_call_operand.hbm [shape: s32[8,16], index: 3, kind: input, shape index: {}]   ;;  %s388_s4 = inlined_call_operand.hbm [shape: f32[16,48], index: 4, kind: output, shape index: {0}]   ;;  %s389_s5 = inlined_call_operand.hbm [shape: s32[16,16], index: 5, kind: output, shape index: {1}]   ;;  %s390_s6 = inlined_call_operand.hbm [shape: s32[16,16], index: 6, kind: output, shape index: {2}]  }
   0x1   :  { %14 = vsyncpa [#allocation8], 0 }
   0x2   :  { %15 = vsyncpa [#allocation6], 0  ;;  %s33_s23 = sshll.u32 %s386_s2, 4  ;;  %s34_s23 = int_to_ptr.hbm [resolvable:$true] %s33_s23 }
   0x3   :  { %16 = vsyncpa [#allocation12], 0  ;;  %s300_s24 = smov [#allocation7]   ;;  %s22_s28 = sshll.u32 %s385_s1, 4  ;;  %s23_s28 = int_to_ptr.hbm [resolvable:$true] %s22_s28 }
   0x4   :  { %s35_s25 = sshll.u32 %s300_s24, 4  ;;  %s301_s29 = smov [#allocation4]   ;;  %s36_s25 = int_to_ptr.vmem [resolvable:$true] %s35_s25 }
   0x5   :  { %38 = dma.hbm_to_vmem [thread:$0]  %s34_s23, 128, %s36_s25, [#allocation8]  }
   0x6   :  { %s24_s30 = sshll.u32 %s301_s29, 4  ;;  %s44_s9 = sshll.u32 %s387_s3, 4  ;;  %s25_s30 = int_to_ptr.vmem [resolvable:$true] %s24_s30  ;;  %s45_s9 = int_to_ptr.hbm [resolvable:$true] %s44_s9 }
   0x7   :  { %27 = dma.hbm_to_vmem [thread:$0]  %s23_s28, 128, %s25_s30, [#allocation5]  }
   0x8   :  { %s302_s2 = smov [#allocation9]  }
   0x9   :  { %s46_s10 = sshll.u32 %s302_s2, 4  ;;  %s47_s10 = int_to_ptr.vmem [resolvable:$true] %s46_s10 }
   0xa   :  { %49 = dma.hbm_to_vmem [thread:$0]  %s45_s9, 128, %s47_s10, [#allocation8]  }
   0xb   :  { %292 = dma.done.wait [#allocation5], 128  }
   0xc   :  { %293 = vsyncadd [#allocation5], 4294967168 }
   0xd   :  { %294 = dma.done.wait [#allocation8], 256  }
   0xe   :  { %295 = vsyncadd [#allocation8], 4294967040  ;;  %vm66_vm0 = vcmask 130048   ;;  %v303_v0 = vmov 0   ;;  %vm63_vm1 = vcmask 392192   ;;  %s304_s1 = smov [#allocation11]  }
   0xf   :  { %67 = vst.msk [vmem:[#allocation11] sm:$0xff] %vm66_vm0, %v303_v0  ;;  %s358_s3 = sshll.u32 %s304_s1, 4  ;;  %s99_s13 = sshll.u32 %s389_s5, 4  ;;  %v305_v1 = vmov 255.0   ;;  %v74_v2 = vld [vmem:[#allocation7] sm:$0xff]  ;;  %v71_v3 = vld [vmem:[#allocation4] sm:$0xff]  ;;  %s98_s3 = int_to_ptr.vmem [resolvable:$true] %s358_s3  ;;  %s100_s13 = int_to_ptr.hbm [resolvable:$true] %s99_s13 }
  0x10   :  { %68 = vst.msk [vmem:[#allocation11 + $0x8] sm:$0xff] %vm66_vm0, %v303_v0  ;;  %s86_s16 = sshll.u32 %s388_s4, 4  ;;  %v77_v4 = vld [vmem:[#allocation9] sm:$0xff]  ;;  %s306_s17 = smov [#allocation10]   ;;  %s87_s16 = int_to_ptr.hbm [resolvable:$true] %s86_s16 }
  0x11   :  { %69 = vst.msk [vmem:[#allocation13] sm:$0xff] %vm66_vm0, %v303_v0  ;;  %s84_s18 = sshll.u32 %s306_s17, 4  ;;  %s75_s5 = scalar_lea.vmem [#allocation11], %s384_s0  ;;  %s85_s18 = int_to_ptr.vmem [resolvable:$true] %s84_s18 }
  0x12   :  { %70 = vst.msk [vmem:[#allocation13 + $0x8] sm:$0xff] %vm66_vm0, %v303_v0  ;;  %s72_s23 = scalar_lea.vmem [#allocation10], %s384_s0  ;;  %s307_s4 = smov [#allocation13]  }
  0x13   :  { %64 = vst.msk [vmem:[#allocation10] sm:$0xff] %vm63_vm1, %v305_v1  ;;  %s110_s24 = sshll.u32 %s307_s4, 4  ;;  %s112_s27 = sshll.u32 %s390_s6, 4  ;;  %s111_s24 = int_to_ptr.vmem [resolvable:$true] %s110_s24  ;;  %s113_s27 = int_to_ptr.hbm [resolvable:$true] %s112_s27 }
  0x14   :  { %65 = vst.msk [vmem:[#allocation10 + $0x8] sm:$0xff] %vm63_vm1, %v305_v1  ;;  %s78_s30 = scalar_lea.vmem [#allocation13], %s384_s0  ;;  %s308_s7 = smov 128  }
  0x15   :  { %76 = vst.msk [vmem:[%s75_s5] sm:$0xff] %vm66_vm0, %v74_v2  ;;  %s309_s8 = smov 8  }
  0x16   :  { %73 = vst.msk [vmem:[%s72_s23] sm:$0xff] %vm63_vm1, %v71_v3 }
  0x17   :  { %79 = vst.msk [vmem:[%s78_s30] sm:$0xff] %vm66_vm0, %v77_v4 }
  0x18   :  { %105 = dma.vmem_to_hbm [thread:$0]  %s98_s3, 256, %s100_s13, [#allocation12], %s308_s7, %s308_s7, %s309_s8  }
  0x19   :  { %92 = dma.vmem_to_hbm [thread:$0]  %s85_s18, 256, %s87_s16, [#allocation6], %s308_s7, %s308_s7, %s309_s8  }
  0x1a   :  { %118 = dma.vmem_to_hbm [thread:$0]  %s111_s24, 256, %s113_s27, [#allocation12], %s308_s7, %s308_s7, %s309_s8  }
  0x1b   :  { %296 = dma.done.wait [#allocation6], 256  }
  0x1c   :  { %297 = vsyncadd [#allocation6], 4294967040 }
  0x1d   :  { %298 = dma.done.wait [#allocation12], 512  }
  0x1e   :  { %299 = vsyncadd [#allocation12], 4294966784 }
  0x1f   :  { %131 = vsyncpa [#allocation5], 1 }
  0x20   :  { %132 = vsyncpa [#allocation8], 1 }
  0x21   :  { %133 = vsyncpa [#allocation6], 1 }
  0x22   :  { %134 = vsyncpa [#allocation12], 1 }

</bundles_post_ra>
